<compile_context>
chip_gen: v6e
topology: v6e:2x2x1
jax: 0.10.0
libtpu: 0.0.40
codegen_flags: <defaults>
</compile_context>

<pallas_src>
import jax
import jax.numpy as jnp
from jax.experimental import pallas as pl
from jax.experimental.pallas import tpu as pltpu


def _round_up(n, m):
    return ((n + m - 1) // m) * m


def _qnet_kernel(x_ref, w1_ref, b1_ref, w2_ref, b2_ref, o_ref):
    # hidden = relu(x @ W1 + b1): cast the activation operand to the weight
    # dtype so bf16 weights stay on the native bf16 MXU path (no-op for f32).
    # Accumulation is f32 via preferred_element_type; bias-add/ReLU in f32.
    x = x_ref[...].astype(w1_ref.dtype)
    h = jnp.dot(x, w1_ref[...], preferred_element_type=jnp.float32)
    h = jnp.maximum(h + b1_ref[...].astype(jnp.float32), 0.0)
    # out = hidden @ W2 + b2. The out dim is the true (narrow) width — a few
    # masked-lane stores are far cheaper than a 128-lane padded HBM writeback.
    y = jnp.dot(h.astype(w2_ref.dtype), w2_ref[...],
                preferred_element_type=jnp.float32)
    y = y + b2_ref[...].astype(jnp.float32)
    o_ref[...] = y.astype(o_ref.dtype)


def linear_qnet_forward(x, w1p, b1p, w2p, b2p, *, batch_tile=2048):
    """Forward pass of Linear_QNet with pre-prepared (padded) params.

    x  : (B, in)        activations
    w1p: (in, hid_p)    linear1 weight, pre-transposed, hidden dim lane-padded
    b1p: (1, hid_p)     linear1 bias, lane-padded
    w2p: (hid_p, out)   linear2 weight, pre-transposed (output dim unpadded)
    b2p: (1, out)       linear2 bias
    Params may be f32 or bf16; math accumulates in f32.
    """
    B, in_size = x.shape
    hid_p = w1p.shape[1]
    out_size = w2p.shape[1]

    # Batch tiling: tb rows per grid step (multiple of 8 sublanes). No batch
    # padding — Pallas masks the ragged last tile's writeback, and rows are
    # independent so over-read garbage rows cannot contaminate valid output.
    tb = min(batch_tile, _round_up(B, 8))
    grid = (pl.cdiv(B, tb),)

    # VMEM budget: double-buffered x/out tiles + f32 hidden intermediate +
    # (double-buffered) resident weights + headroom. Clamped to v7x's 32 MiB
    # scoped per-TC limit (half of v5e/v6e).
    itemsize = jnp.dtype(x.dtype).itemsize
    bytes_x = tb * in_size * itemsize
    bytes_o = tb * out_size * 4
    bytes_h = tb * hid_p * 4
    bytes_w = sum(int(a.size) * a.dtype.itemsize for a in (w1p, b1p, w2p, b2p))
    vmem_budget = 2 * (bytes_x + bytes_o) + bytes_h + 2 * bytes_w + (4 << 20)
    vmem_budget = int(min(max(vmem_budget, 8 << 20), 32 << 20))

    return pl.pallas_call(
        _qnet_kernel,
        out_shape=jax.ShapeDtypeStruct((B, out_size), x.dtype),
        grid=grid,
        in_specs=[
            # batch tile advances with the grid
            pl.BlockSpec((tb, in_size), lambda i: (i, 0)),
            # weights/biases: constant block index -> DMA'd once, VMEM-resident
            pl.BlockSpec((in_size, hid_p), lambda i: (0, 0)),
            pl.BlockSpec((1, hid_p), lambda i: (0, 0)),
            pl.BlockSpec((hid_p, out_size), lambda i: (0, 0)),
            pl.BlockSpec((1, out_size), lambda i: (0, 0)),
        ],
        out_specs=pl.BlockSpec((tb, out_size), lambda i: (i, 0)),
        compiler_params=pltpu.CompilerParams(
            dimension_semantics=("parallel",),   # megacore-shards batch tiles on v7x
            vmem_limit_bytes=vmem_budget,
        ),
    )(x, w1p, b1p, w2p, b2p)


def prepare_params(w1, b1, w2, b2):
    """One-time (outside the hot path) lane alignment of the hidden dim.

    w1: (in, hid)  b1: (hid,)/(1, hid)  w2: (hid, out)  b2: (out,)/(1, out)
    Pads hidden -> multiple of 128 lanes (zero pads contribute exactly 0,
    relu(0+0)=0 keeps padded hidden lanes inert). Output dim is left unpadded.
    """
    b1 = b1.reshape(1, -1)
    b2 = b2.reshape(1, -1)
    hid = w1.shape[1]
    pad = _round_up(hid, 128) - hid
    w1p = jnp.pad(w1, ((0, 0), (0, pad)))
    b1p = jnp.pad(b1, ((0, 0), (0, pad)))
    w2p = jnp.pad(w2, ((0, pad), (0, 0)))
    return w1p, b1p, w2p, b2


def init_params(key, input_size, hidden_size, output_size, dtype=jnp.float32):
    """PyTorch nn.Linear-style U(-1/sqrt(fan_in), +1/sqrt(fan_in)) init, stored
    pre-transposed as (in_features, out_features). On v6e/v7x pass
    dtype=jnp.bfloat16 to halve weight DMA bytes (kernel still accumulates f32;
    note v7x MXU is bf16/fp8 only — no int8 path)."""
    k1, k2, k3, k4 = jax.random.split(key, 4)
    bound1 = 1.0 / (input_size ** 0.5)
    bound2 = 1.0 / (hidden_size ** 0.5)
    w1 = jax.random.uniform(k1, (input_size, hidden_size), dtype, -bound1, bound1)
    b1 = jax.random.uniform(k2, (1, hidden_size), dtype, -bound1, bound1)
    w2 = jax.random.uniform(k3, (hidden_size, output_size), dtype, -bound2, bound2)
    b2 = jax.random.uniform(k4, (1, output_size), dtype, -bound2, bound2)
    return w1, b1, w2, b2


if __name__ == "__main__":
    # Canonical snake-game Q-net shapes: Linear_QNet(11, 256, 3).
    # batch=10 (not a multiple of the tile) exercises the masked ragged tile.
    batch, input_size, hidden_size, output_size = 10, 11, 256, 3

    key = jax.random.PRNGKey(0)
    kx, kp = jax.random.split(key)
    x = jax.random.normal(kx, (batch, input_size), dtype=jnp.float32)
    w1, b1, w2, b2 = init_params(kp, input_size, hidden_size, output_size)
    params = prepare_params(w1, b1, w2, b2)   # pad once, outside the hot path

    # Single-tile path (tb >= B, ragged block).
    out = jax.block_until_ready(linear_qnet_forward(x, *params))

    # Multi-tile path (tb=8 -> grid=2, last tile has only 2 valid rows).
    out_tiled = jax.block_until_ready(
        linear_qnet_forward(x, *params, batch_tile=8))

    # Pure-JAX reference (same math as the PyTorch forward).
    ref = jnp.maximum(x @ w1 + b1, 0.0) @ w2 + b2
    assert out.shape == (batch, output_size)
    assert jnp.allclose(out, ref, atol=1e-5, rtol=1e-5)
    assert jnp.allclose(out_tiled, ref, atol=1e-5, rtol=1e-5)

    # TODO(synk): Linear_QNet.save() (torch.save checkpointing) is host-side
    # file I/O and intentionally not part of the kernel.

    print("KERNEL_OK")
</pallas_src>

<mosaic_0001>
module attributes {stable_mosaic.version = 11 : i64} {
  func.func @_qnet_kernel(%arg0: i32, %arg1: memref<16x11xf32, #tpu.memory_space<vmem>>, %arg2: memref<11x256xf32, #tpu.memory_space<vmem>>, %arg3: memref<1x256xf32, #tpu.memory_space<vmem>>, %arg4: memref<256x3xf32, #tpu.memory_space<vmem>>, %arg5: memref<1x3xf32, #tpu.memory_space<vmem>>, %arg6: memref<16x3xf32, #tpu.memory_space<vmem>>) attributes {dimension_semantics = [#tpu.dimension_semantics<parallel>], iteration_bounds = array<i64: 1>, scalar_prefetch = 0 : i64, scratch_operands = 0 : i64, tpu.core_type = #tpu.core_type<tc>, window_params = [{transform_indices = @transform_0, window_bounds = array<i64: 16, 11>}, {pipeline_mode = #tpu.pipeline_mode<synchronous>, transform_indices = @transform_1, window_bounds = array<i64: 11, 256>}, {pipeline_mode = #tpu.pipeline_mode<synchronous>, transform_indices = @transform_2, window_bounds = array<i64: 1, 256>}, {pipeline_mode = #tpu.pipeline_mode<synchronous>, transform_indices = @transform_3, window_bounds = array<i64: 256, 3>}, {pipeline_mode = #tpu.pipeline_mode<synchronous>, transform_indices = @transform_4, window_bounds = array<i64: 1, 3>}, {transform_indices = @transform_5, window_bounds = array<i64: 16, 3>}]} {
    %c0 = arith.constant 0 : index
    %c0_0 = arith.constant 0 : index
    %0 = vector.load %arg1[%c0, %c0_0] : memref<16x11xf32, #tpu.memory_space<vmem>>, vector<16x11xf32>
    %c0_1 = arith.constant 0 : index
    %c0_2 = arith.constant 0 : index
    %1 = vector.load %arg2[%c0_1, %c0_2] : memref<11x256xf32, #tpu.memory_space<vmem>>, vector<11x256xf32>
    %cst = arith.constant dense<0.000000e+00> : vector<16x256xf32>
    %2 = tpu.matmul %0, %1, %cst {dimension_numbers = #tpu.dot_dimension_numbers<[1], [0], [0], [1], [0, 0, 1, 1], [], []>} : vector<16x11xf32>, vector<11x256xf32>, vector<16x256xf32> -> vector<16x256xf32>
    %c0_3 = arith.constant 0 : index
    %c0_4 = arith.constant 0 : index
    %3 = vector.load %arg3[%c0_3, %c0_4] : memref<1x256xf32, #tpu.memory_space<vmem>>, vector<1x256xf32>
    %4 = vector.broadcast %3 : vector<1x256xf32> to vector<16x256xf32>
    %5 = arith.addf %2, %4 : vector<16x256xf32>
    %cst_5 = arith.constant 0.000000e+00 : f32
    %6 = vector.broadcast %cst_5 : f32 to vector<16x256xf32>
    %7 = arith.maximumf %5, %6 : vector<16x256xf32>
    %c0_6 = arith.constant 0 : index
    %c0_7 = arith.constant 0 : index
    %8 = vector.load %arg4[%c0_6, %c0_7] : memref<256x3xf32, #tpu.memory_space<vmem>>, vector<256x3xf32>
    %cst_8 = arith.constant dense<0.000000e+00> : vector<16x3xf32>
    %9 = tpu.matmul %7, %8, %cst_8 {dimension_numbers = #tpu.dot_dimension_numbers<[1], [0], [0], [1], [0, 0, 1, 1], [], []>} : vector<16x256xf32>, vector<256x3xf32>, vector<16x3xf32> -> vector<16x3xf32>
    %c0_9 = arith.constant 0 : index
    %c0_10 = arith.constant 0 : index
    %10 = vector.load %arg5[%c0_9, %c0_10] : memref<1x3xf32, #tpu.memory_space<vmem>>, vector<1x3xf32>
    %11 = vector.broadcast %10 : vector<1x3xf32> to vector<16x3xf32>
    %12 = arith.addf %9, %11 : vector<16x3xf32>
    %c0_11 = arith.constant 0 : index
    %c0_12 = arith.constant 0 : index
    %13 = vector.load %arg6[%c0_11, %c0_12] : memref<16x3xf32, #tpu.memory_space<vmem>>, vector<16x3xf32>
    tpu.vector_store %arg6[%c0_11, %c0_12], %12 {strides = array<i32>} : memref<16x3xf32, #tpu.memory_space<vmem>>, vector<16x3xf32>,
    return
  }
  func.func @transform_0(%arg0: i32) -> (i32, i32) {
    %c0_i32 = arith.constant 0 : i32
    %c0_i32_0 = arith.constant 0 : i32
    return %arg0, %c0_i32 : i32, i32
  }
  func.func @transform_1(%arg0: i32) -> (i32, i32) {
    %c0_i32 = arith.constant 0 : i32
    %c0_i32_0 = arith.constant 0 : i32
    %c0_i32_1 = arith.constant 0 : i32
    return %c0_i32, %c0_i32_0 : i32, i32
  }
  func.func @transform_2(%arg0: i32) -> (i32, i32) {
    %c0_i32 = arith.constant 0 : i32
    %c0_i32_0 = arith.constant 0 : i32
    %c0_i32_1 = arith.constant 0 : i32
    return %c0_i32, %c0_i32_0 : i32, i32
  }
  func.func @transform_3(%arg0: i32) -> (i32, i32) {
    %c0_i32 = arith.constant 0 : i32
    %c0_i32_0 = arith.constant 0 : i32
    %c0_i32_1 = arith.constant 0 : i32
    return %c0_i32, %c0_i32_0 : i32, i32
  }
  func.func @transform_4(%arg0: i32) -> (i32, i32) {
    %c0_i32 = arith.constant 0 : i32
    %c0_i32_0 = arith.constant 0 : i32
    %c0_i32_1 = arith.constant 0 : i32
    return %c0_i32, %c0_i32_0 : i32, i32
  }
  func.func @transform_5(%arg0: i32) -> (i32, i32) {
    %c0_i32 = arith.constant 0 : i32
    %c0_i32_0 = arith.constant 0 : i32
    return %arg0, %c0_i32 : i32, i32
  }
}

</mosaic_0001>

<bundles_post_ra>
// kernel: tpu_custom_call.1
= control target key start
LH: loop header
LB: loop body
LE: loop exit
PB: predicated region body
PF: predicated region fallthrough
CT: control target
= control target key end

     0   :  { %vm45_vm0 = vcmask 1042432   ;;  %v298_v3 = vmov 0.0   ;;  %vm38_vm1 = vcmask 89088   ;;  %v28_v39 = vlaneseq  ;;  %s457_s1 = inlined_call_operand.vmem [shape: f32[11,256], index: 1, kind: input, shape index: {}]   ;;  %s458_s0 = inlined_call_operand.vmem [shape: f32[10,11], index: 0, kind: input, shape index: {}]   ;;  %s459_s3 = inlined_call_operand.vmem [shape: f32[256,3], index: 3, kind: input, shape index: {}]   ;;  %s460_s2 = inlined_call_operand.vmem [shape: f32[1,256], index: 2, kind: input, shape index: {}]   ;;  %s461_s4 = inlined_call_operand.vmem [shape: f32[1,3], index: 4, kind: input, shape index: {}]   ;;  %s462_s5 = inlined_call_operand.vmem [shape: f32[10,3], index: 5, kind: output, shape index: {}]  }
   0x1   :  { %v25_v0 = vld [vmem:[%s457_s1 + $0x18] sm:$0x7]  ;;  %v24_v1 = vld [vmem:[%s457_s1 + $0x10] sm:$0x7]  ;;  %v23_v2 = vld [vmem:[%s457_s1 + $0x8] sm:$0xff]  ;;  %116 = vmatprep.mubr.f32.mxu0 %v298_v3  ;;  %vm247_vm2 = vcmask 23552  }
   0x2   :  { %254 = vmatprep.subr.msk.mxu0 %vm45_vm0, %v25_v0  ;;  %v22_v4 = vld [vmem:[%s457_s1] sm:$0xff]  ;;  %v164_v6 = vld [vmem:[%s459_s3 + $0xf8] sm:$0xff]  ;;  %v163_v8 = vld [vmem:[%s459_s3 + $0xf0] sm:$0xff]  ;;  %v29_v40 = vshrl.u32 %v28_v39, 7 }
   0x3   :  { %v20_v5 = vld [vmem:[%s458_s0] sm:$0xff]  ;;  %255 = vmatpush1.msk.msra.mxu0 %vm45_vm0, %v24_v1  ;;  %v148_v7 = vld [vmem:[%s459_s3 + $0x78] sm:$0xff]  ;;  %259 = vmatprep.subr.mxu1 %v164_v6  ;;  %v147_v9 = vld [vmem:[%s459_s3 + $0x70] sm:$0xff] }
   0x4   :  { %82 = vmatprep.subr.mxu0 %v23_v2  ;;  %260 = vmatpush3.msra.mxu1 %v148_v7  ;;  %v162_v10 = vld [vmem:[%s459_s3 + $0xe8] sm:$0xff]  ;;  %v161_v13 = vld [vmem:[%s459_s3 + $0xe0] sm:$0xff]  ;;  %v160_v15 = vld [vmem:[%s459_s3 + $0xd8] sm:$0xff]  ;;  %v30_v41 = vsub.s32 0, %v29_v40  ;;  %v34_v43 = vsub.s32 1, %v29_v40 }
   0x5   :  { %83 = vmatpush1.msra.mxu0 %v22_v4  ;;  %261 = vmatprep.subr.mxu1 %v163_v8  ;;  %v146_v11 = vld [vmem:[%s459_s3 + $0x68] sm:$0xff]  ;;  %v145_v14 = vld [vmem:[%s459_s3 + $0x60] sm:$0xff]  ;;  %v144_v16 = vld [vmem:[%s459_s3 + $0x58] sm:$0xff] }
   0x6   :  { %256 = vmatmul.mubr.msk.f32.vlgmr.msra.gmra.mxu0 %vm38_vm1, %v20_v5  ;;  %v21_v12 = vld [vmem:[%s458_s0 + $0x8] sm:$0xff]  ;;  %262 = vmatpush3.msra.mxu1 %v147_v9  ;;  %v159_v17 = vld [vmem:[%s459_s3 + $0xd0] sm:$0xff]  ;;  %v157_v21 = vld [vmem:[%s459_s3 + $0xc0] sm:$0xff] }
   0x7   :  { %122 = vmatprep.mubr.f32.mxu0 %v298_v3  ;;  %263 = vmatprep.subr.mxu1 %v162_v10  ;;  %v143_v18 = vld [vmem:[%s459_s3 + $0x50] sm:$0xff]  ;;  %v158_v19 = vld [vmem:[%s459_s3 + $0xc8] sm:$0xff]  ;;  %v141_v22 = vld [vmem:[%s459_s3 + $0x40] sm:$0xff] }
   0x8   :  { %264 = vmatpush3.msra.mxu1 %v146_v11  ;;  %v142_v20 = vld [vmem:[%s459_s3 + $0x48] sm:$0xff]  ;;  %v156_v23 = vld [vmem:[%s459_s3 + $0xb8] sm:$0xff]  ;;  %v155_v25 = vld [vmem:[%s459_s3 + $0xb0] sm:$0xff] }
   0x9   :  { %265 = vmatprep.subr.mxu1 %v161_v13  ;;  %v140_v24 = vld [vmem:[%s459_s3 + $0x38] sm:$0xff]  ;;  %v139_v26 = vld [vmem:[%s459_s3 + $0x30] sm:$0xff]  ;;  %v154_v27 = vld [vmem:[%s459_s3 + $0xa8] sm:$0xff] }
   0xa   :  { %257 = vmatmul.mubr.msk.f32.gmra.mxu0 %vm38_vm1, %v21_v12  ;;  %266 = vmatpush3.msra.mxu1 %v145_v14  ;;  %v138_v28 = vld [vmem:[%s459_s3 + $0x28] sm:$0xff]  ;;  %v153_v29 = vld [vmem:[%s459_s3 + $0xa0] sm:$0xff]  ;;  %v152_v31 = vld [vmem:[%s459_s3 + $0x98] sm:$0xff] }
   0xb   :  { %267 = vmatprep.subr.mxu1 %v160_v15  ;;  %v137_v30 = vld [vmem:[%s459_s3 + $0x20] sm:$0xff]  ;;  %v136_v32 = vld [vmem:[%s459_s3 + $0x18] sm:$0xff]  ;;  %v151_v33 = vld [vmem:[%s459_s3 + $0x90] sm:$0xff] }
   0xc   :  { %268 = vmatpush3.msra.mxu1 %v144_v16  ;;  %v135_v34 = vld [vmem:[%s459_s3 + $0x10] sm:$0xff]  ;;  %v150_v35 = vld [vmem:[%s459_s3 + $0x88] sm:$0xff]  ;;  %v149_v37 = vld [vmem:[%s459_s3 + $0x80] sm:$0xff] }
   0xd   :  { %269 = vmatprep.subr.mxu1 %v159_v17  ;;  %v134_v36 = vld [vmem:[%s459_s3 + $0x8] sm:$0xff]  ;;  %v133_v38 = vld [vmem:[%s459_s3] sm:$0xff] }
   0xe   :  { %270 = vmatpush3.msra.mxu1 %v143_v18  ;;  %v26_v42 = vld [vmem:[%s460_s2] sm:$0x3] }
   0xf   :  { %271 = vmatprep.subr.mxu1 %v158_v19  ;;  %v31_v44 = vrot.slane %v26_v42, %v30_v41  ;;  %v35_v45 = vrot.slane %v26_v42, %v34_v43  ;;  %v258_v59 = vld [vmem:[%s461_s4] ss:$0 sm:$0xff] }
  0x10   :  { %272 = vmatpush3.msra.mxu1 %v142_v20 }
  0x11   :  { %273 = vmatprep.subr.mxu1 %v157_v21 }
  0x12   :  { %274 = vmatpush3.msra.mxu1 %v141_v22 }
  0x13   :  { %275 = vmatprep.subr.mxu1 %v156_v23 }
  0x14   :  { %276 = vmatpush3.msra.mxu1 %v140_v24 }
  0x15   :  { %277 = vmatprep.subr.mxu1 %v155_v25 }
  0x16   :  { %278 = vmatpush3.msra.mxu1 %v139_v26 }
  0x17   :  { %279 = vmatprep.subr.mxu1 %v154_v27 }
  0x18   :  { %280 = vmatpush3.msra.mxu1 %v138_v28 }
  0x19   :  { %281 = vmatprep.subr.mxu1 %v153_v29 }
  0x1a   :  { %282 = vmatpush3.msra.mxu1 %v137_v30 }
  0x1b   :  { %283 = vmatprep.subr.mxu1 %v152_v31 }
  0x1c   :  { %284 = vmatpush3.msra.mxu1 %v136_v32 }
  0x1d   :  { %285 = vmatprep.subr.mxu1 %v151_v33 }
  0x1e   :  { %286 = vmatpush3.msra.mxu1 %v135_v34 }
  0x1f   :  { %287 = vmatprep.subr.mxu1 %v150_v35 }
  0x20   :  { %288 = vmatpush3.msra.mxu1 %v134_v36 }
  0x21   :  { %289 = vmatprep.subr.mxu1 %v149_v37 }
  0x22   :  { %290 = vmatpush3.msra.mxu1 %v133_v38 }
  0xc6   :  { %v118_v46 = vpop.f32.mrf.mxu0 }
  0xc7   :  { %v119_v47 = vadd.f32 %v118_v46, %v31_v44 }
  0xc8   :  { %v120_v48 = vpop.f32.mrf.mxu0 }
  0xc9   :  { %v121_v49 = vadd.f32 %v120_v48, %v35_v45  ;;  %v129_v52 = vmax.f32 %v119_v47, 0.0 }
  0xca   :  { %v124_v50 = vpop.f32.mrf.mxu0 }
  0xcb   :  { %v130_v51 = vmax.f32 %v121_v49, 0.0  ;;  %v125_v53 = vadd.f32 %v124_v50, %v31_v44 }
  0xcc   :  { %v126_v54 = vpop.f32.mrf.mxu0 }
  0xcd   :  { %v127_v55 = vadd.f32 %v126_v54, %v35_v45  ;;  %236 = vmatprep.mubr.f32.mxu1 %v130_v51  ;;  %v131_v57 = vmax.f32 %v125_v53, 0.0 }
  0xce   :  { %237 = vmatmul.mubr.f32.vlgmr.msra.gmra.mxu1 %v129_v52 }
  0xcf   :  { %v132_v56 = vmax.f32 %v127_v55, 0.0 }
  0xd1   :  { %241 = vmatprep.mubr.f32.mxu1 %v132_v56 }
  0xd2   :  { %242 = vmatmul.mubr.f32.gmra.mxu1 %v131_v57 }
 0x18e   :  { %v291_v58 = vpop.f32.mrf.mxu1 }
 0x190   :  { %v292_v60 = vpop.f32.mrf.mxu1 }
 0x191   :  { %v293_v61 = vadd.f32 %v292_v60, %v291_v58 }
 0x192   :  { %v294_v62 = vpop.f32.mrf.mxu1 }
 0x193   :  { %v239_v63 = vadd.f32 %v293_v61, %v258_v59 }
 0x194   :  { %v295_v0 = vpop.f32.mrf.mxu1 }
 0x195   :  { %248 = vst.msk [vmem:[%s462_s5] sm:$0xff] %vm247_vm2, %v239_v63  ;;  %v296_v1 = vadd.f32 %v295_v0, %v294_v62 }
 0x197   :  { %v244_v2 = vadd.f32 %v296_v1, %v258_v59 }
 0x199   :  { %249 = vst.msk [vmem:[%s462_s5 + $0x8] sm:$0xff] %vm247_vm2, %v244_v2 }

</bundles_post_ra>
